<compile_context>
chip_gen: v7x
topology: tpu7x:2x2x1
jax: 0.10.0
libtpu: 0.0.40
codegen_flags: <defaults>
</compile_context>

<pallas_src>
import functools

import jax
import jax.numpy as jnp
from jax import lax
from jax.experimental import pallas as pl
from jax.experimental.pallas import tpu as pltpu

_LANE = 128
_SUBLANE = 8
_CO_CHUNK = 8          # in-kernel output-channel chunk (vreg-resident acc rows)
_M_TILE_CAP = 512      # lane-dense mode-tile cap
_M_TARGET_TILES = 8    # aim for >= ~8 grid steps along the mode axis
_CO_TILE_CAP = 32      # BlockSpec Cout tile cap (bounds per-step VMEM)


def _round_up(x, n):
    return pl.cdiv(x, n) * n


def _choose_m_tile(m_total):
    """Lane-dense (multiple of 128) mode tile giving >= ~_M_TARGET_TILES steps."""
    tm = _round_up(pl.cdiv(m_total, _M_TARGET_TILES), _LANE)
    return max(_LANE, min(_M_TILE_CAP, tm))


def _choose_co_tile(c_padded):
    """Largest multiple of 8 that divides c_padded and is <= _CO_TILE_CAP."""
    best = _SUBLANE
    c = _SUBLANE
    while c <= min(c_padded, _CO_TILE_CAP):
        if c_padded % c == 0:
            best = c
        c += _SUBLANE
    return best


# ----------------------------------------------------------------------------
# Pallas kernel: per-mode channel mixing
#   out[b, o, m] = sum_i x[i, b, m] * w[i, o, m]
# ----------------------------------------------------------------------------
def _spectral_mix_kernel(x_ref, w_ref, o_ref):
    # x_ref: (Cin, B, TM)   w_ref: (Cin, TCo, TM)   o_ref: (B, TCo, TM)
    cin, bsz, _ = x_ref.shape
    tco = w_ref.shape[1]

    # B, TCo/_CO_CHUNK and Cin are small & static -> fully unrolled MAC loops.
    for b in range(bsz):
        for c0 in range(0, tco, _CO_CHUNK):
            def term(i, b=b, c0=c0):
                xb = x_ref[i, b:b + 1, :]                 # (1, TM) x row
                wc = w_ref[i, c0:c0 + _CO_CHUNK, :]       # (8, TM) weight chunk
                return xb * wc                            # sublane-broadcast mul
            # Two accumulators break the serial VALU dependency chain over Cin;
            # acc is (8, TM) -> a handful of vregs, never spilled to VMEM.
            acc0 = term(0)
            if cin > 1:
                acc1 = term(1)
                for i in range(2, cin):
                    if i % 2 == 0:
                        acc0 = acc0 + term(i)
                    else:
                        acc1 = acc1 + term(i)
                acc0 = acc0 + acc1
            o_ref[b, c0:c0 + _CO_CHUNK, :] = acc0         # one store per chunk


def spectral_mix(x_modes, w_modes, *, m_tile):
    """x: (Cin, B, Mp) f32, w: (Cin, Cp, Mp) f32 -> (B, Cp, Mp) f32.

    Mp must be a multiple of m_tile (and 128); Cp a multiple of 8.
    out[b, o, m] = sum_i x[i, b, m] * w[i, o, m]
    """
    Cin, B, Mp = x_modes.shape
    Cp = w_modes.shape[1]
    assert w_modes.shape == (Cin, Cp, Mp), (w_modes.shape, x_modes.shape)
    assert Mp % m_tile == 0 and m_tile % _LANE == 0
    assert Cp % _SUBLANE == 0

    tco = _choose_co_tile(Cp)
    n_m = Mp // m_tile
    n_co = Cp // tco

    # Grid: mode tiles outermost, Cout blocks innermost.  The x BlockSpec ignores
    # the Cout index, so the x block stays resident across Cout blocks (no
    # re-DMA); both axes are parallel (megacore sharding on multi-TC parts).
    return pl.pallas_call(
        _spectral_mix_kernel,
        out_shape=jax.ShapeDtypeStruct((B, Cp, Mp), jnp.float32),
        grid=(n_m, n_co),
        in_specs=[
            pl.BlockSpec((Cin, B, m_tile), lambda m, c: (0, 0, m)),
            pl.BlockSpec((Cin, tco, m_tile), lambda m, c: (0, c, m)),
        ],
        out_specs=pl.BlockSpec((B, tco, m_tile), lambda m, c: (0, c, m)),
        compiler_params=pltpu.CompilerParams(
            dimension_semantics=("parallel", "parallel"),
            vmem_limit_bytes=64 * 1024 * 1024,   # v5e's 16 MiB default is too tight
        ),
    )(x_modes, w_modes)


# ----------------------------------------------------------------------------
# One-time weight prep (done at init, not per forward pass)
# ----------------------------------------------------------------------------
def prepare_spectral_weights(weights1, weights2):
    """(Cin,Cout,w1,w2,2) x2 -> (Cin, Cp, Mp).

    Both mode bands are concatenated along the mode axis; Cout is zero-padded to
    a multiple of 8 (full sublane tiles) and the mode axis is zero-padded to a
    multiple of the lane-dense mode tile.  All padding happens once at init.
    """
    Cin, Cout, w1, w2, _ = weights1.shape
    m_band = w1 * w2 * 2
    m_total = 2 * m_band
    w = jnp.concatenate([weights1.reshape(Cin, Cout, m_band),
                         weights2.reshape(Cin, Cout, m_band)], axis=-1)
    tm = _choose_m_tile(m_total)
    Mp = _round_up(m_total, tm)
    Cp = _round_up(Cout, _SUBLANE)
    if (Cp, Mp) != (Cout, m_total):
        w = jnp.pad(w, ((0, 0), (0, Cp - Cout), (0, Mp - m_total)))
    return w


# ----------------------------------------------------------------------------
# Forward pass (FFT glue in plain JAX, mode mixing in Pallas)
# ----------------------------------------------------------------------------
def born_fourier_conv2d(x, x_eps, w_cat, out_c, wavenumber1, wavenumber2):
    B, Cin, H, W = x.shape
    w1, w2 = wavenumber1, wavenumber2
    Wf = W // 2 + 1
    m_band = w1 * w2 * 2
    m_total = 2 * m_band
    tm = _choose_m_tile(m_total)
    Mp = _round_up(m_total, tm)
    assert 2 * w1 <= H and w2 <= Wf, "wavenumbers exceed spectrum extent"
    assert w_cat.shape[0] == Cin and w_cat.shape[-1] == Mp, w_cat.shape

    # Born product fused with the FFT input prep by XLA (no Pallas round trip).
    x_ft = jnp.fft.rfft2(x * x_eps)                          # (B, Cin, H, Wf) c64

    def modes_cin_first(c):                                  # complex (B,Cin,w1,w2)
        r = jnp.stack([c.real, c.imag], axis=-1).astype(jnp.float32)
        return jnp.transpose(r.reshape(B, Cin, m_band), (1, 0, 2))   # (Cin,B,m_band)

    x_modes = jnp.concatenate(
        [modes_cin_first(x_ft[:, :, :w1, :w2]),
         modes_cin_first(x_ft[:, :, H - w1:, :w2])], axis=-1)        # (Cin,B,m_total)
    if Mp != m_total:                                        # skipped when aligned
        x_modes = jnp.pad(x_modes, ((0, 0), (0, 0), (0, Mp - m_total)))

    out = spectral_mix(x_modes, w_cat, m_tile=tm)            # (B, Cp, Mp) f32
    out = out[:, :out_c, :m_total]                           # drop Cout/mode padding

    o_lo = out[:, :, :m_band].reshape(B, out_c, w1, w2, 2)
    o_hi = out[:, :, m_band:].reshape(B, out_c, w1, w2, 2)
    o_lo_c = lax.complex(o_lo[..., 0], o_lo[..., 1])
    o_hi_c = lax.complex(o_hi[..., 0], o_hi[..., 1])

    # Build the full spectrum with a single concat + pad (no zeros + scatter).
    mid = jnp.zeros((B, out_c, H - 2 * w1, w2), dtype=o_lo_c.dtype)
    band = jnp.concatenate([o_lo_c, mid, o_hi_c], axis=2)    # (B, out_c, H, w2)
    out_ft = jnp.pad(band, ((0, 0), (0, 0), (0, 0), (0, Wf - w2)))
    return jnp.fft.irfft2(out_ft, s=(H, W))                  # (B, out_c, H, W) f32


# ----------------------------------------------------------------------------
# Pure-JAX reference (mirrors the PyTorch forward) for verification
# ----------------------------------------------------------------------------
def born_fourier_conv2d_ref(x, x_eps, weights1, weights2, wavenumber1, wavenumber2):
    B, Cin, H, W = x.shape
    Cout = weights1.shape[1]
    w1, w2 = wavenumber1, wavenumber2
    Wf = W // 2 + 1

    x_ft = jnp.fft.rfft2(x * x_eps)
    x_ft_r = jnp.stack([jnp.real(x_ft), jnp.imag(x_ft)], axis=-1)

    def compl_mul2d(inp, w):
        return jnp.einsum('bixyz,ioxyz->boxyz', inp, w)

    out_ft = jnp.zeros((B, Cout, H, Wf, 2), dtype=jnp.float32)
    out_ft = out_ft.at[:, :, :w1, :w2, :].set(
        compl_mul2d(x_ft_r[:, :, :w1, :w2, :], weights1))
    out_ft = out_ft.at[:, :, H - w1:, :w2, :].set(
        compl_mul2d(x_ft_r[:, :, H - w1:, :w2, :], weights2))

    out_c = out_ft[..., 0] + 1j * out_ft[..., 1]
    return jnp.fft.irfft2(out_c, s=(H, W))


# ----------------------------------------------------------------------------
if __name__ == "__main__":
    B, Cin, Cout = 2, 4, 4
    H, W = 16, 16
    wavenumber1, wavenumber2 = 4, 5            # w2 <= W//2 + 1 = 9

    key = jax.random.PRNGKey(0)
    k_x, k_eps, k_w1, k_w2 = jax.random.split(key, 4)

    x = jax.random.normal(k_x, (B, Cin, H, W), dtype=jnp.float32)
    x_eps = jax.random.normal(k_eps, (B, Cin, H, W), dtype=jnp.float32)

    scale = 1.0 / (Cin * Cout)
    weights1 = scale * jax.random.uniform(
        k_w1, (Cin, Cout, wavenumber1, wavenumber2, 2), dtype=jnp.float32)
    weights2 = scale * jax.random.uniform(
        k_w2, (Cin, Cout, wavenumber1, wavenumber2, 2), dtype=jnp.float32)

    # Weight reshape/concat/padding hoisted out of the forward (done once at init).
    w_cat = prepare_spectral_weights(weights1, weights2)

    fwd = jax.jit(functools.partial(born_fourier_conv2d,
                                    out_c=Cout,
                                    wavenumber1=wavenumber1,
                                    wavenumber2=wavenumber2))
    out = jax.block_until_ready(fwd(x, x_eps, w_cat))

    ref = jax.block_until_ready(
        born_fourier_conv2d_ref(x, x_eps, weights1, weights2,
                                wavenumber1, wavenumber2))

    assert out.shape == (B, Cout, H, W), out.shape
    assert out.dtype == jnp.float32, out.dtype
    assert jnp.allclose(out, ref, atol=1e-5, rtol=1e-5), \
        float(jnp.max(jnp.abs(out - ref)))

    print("KERNEL_OK")
</pallas_src>

<mosaic_0001>
module attributes {stable_mosaic.version = 11 : i64} {
  func.func @_spectral_mix_kernel(%arg0: i32, %arg1: i32, %arg2: memref<4x2x128xf32, #tpu.memory_space<vmem>>, %arg3: memref<4x8x128xf32, #tpu.memory_space<vmem>>, %arg4: memref<2x8x128xf32, #tpu.memory_space<vmem>>) attributes {dimension_semantics = [#tpu.dimension_semantics<parallel>, #tpu.dimension_semantics<parallel>], iteration_bounds = array<i64: 1, 1>, scalar_prefetch = 0 : i64, scratch_operands = 0 : i64, tpu.core_type = #tpu.core_type<tc>, window_params = [{transform_indices = @transform_0, window_bounds = array<i64: 4, 2, 128>}, {transform_indices = @transform_1, window_bounds = array<i64: 4, 8, 128>}, {transform_indices = @transform_2, window_bounds = array<i64: 2, 8, 128>}]} {
    %c0 = arith.constant 0 : index
    %c0_0 = arith.constant 0 : index
    %c0_1 = arith.constant 0 : index
    %0 = vector.load %arg2[%c0, %c0_0, %c0_1] : memref<4x2x128xf32, #tpu.memory_space<vmem>>, vector<1x1x128xf32>
    %1 = vector.shape_cast %0 : vector<1x1x128xf32> to vector<1x128xf32>
    %c0_2 = arith.constant 0 : index
    %c0_3 = arith.constant 0 : index
    %c0_4 = arith.constant 0 : index
    %2 = vector.load %arg3[%c0_2, %c0_3, %c0_4] : memref<4x8x128xf32, #tpu.memory_space<vmem>>, vector<1x8x128xf32>
    %3 = vector.shape_cast %2 : vector<1x8x128xf32> to vector<8x128xf32>
    %4 = vector.broadcast %1 : vector<1x128xf32> to vector<8x128xf32>
    %5 = arith.mulf %4, %3 : vector<8x128xf32>
    %c1 = arith.constant 1 : index
    %c0_5 = arith.constant 0 : index
    %c0_6 = arith.constant 0 : index
    %6 = vector.load %arg2[%c1, %c0_5, %c0_6] : memref<4x2x128xf32, #tpu.memory_space<vmem>>, vector<1x1x128xf32>
    %7 = vector.shape_cast %6 : vector<1x1x128xf32> to vector<1x128xf32>
    %c1_7 = arith.constant 1 : index
    %c0_8 = arith.constant 0 : index
    %c0_9 = arith.constant 0 : index
    %8 = vector.load %arg3[%c1_7, %c0_8, %c0_9] : memref<4x8x128xf32, #tpu.memory_space<vmem>>, vector<1x8x128xf32>
    %9 = vector.shape_cast %8 : vector<1x8x128xf32> to vector<8x128xf32>
    %10 = vector.broadcast %7 : vector<1x128xf32> to vector<8x128xf32>
    %11 = arith.mulf %10, %9 : vector<8x128xf32>
    %c2 = arith.constant 2 : index
    %c0_10 = arith.constant 0 : index
    %c0_11 = arith.constant 0 : index
    %12 = vector.load %arg2[%c2, %c0_10, %c0_11] : memref<4x2x128xf32, #tpu.memory_space<vmem>>, vector<1x1x128xf32>
    %13 = vector.shape_cast %12 : vector<1x1x128xf32> to vector<1x128xf32>
    %c2_12 = arith.constant 2 : index
    %c0_13 = arith.constant 0 : index
    %c0_14 = arith.constant 0 : index
    %14 = vector.load %arg3[%c2_12, %c0_13, %c0_14] : memref<4x8x128xf32, #tpu.memory_space<vmem>>, vector<1x8x128xf32>
    %15 = vector.shape_cast %14 : vector<1x8x128xf32> to vector<8x128xf32>
    %16 = vector.broadcast %13 : vector<1x128xf32> to vector<8x128xf32>
    %17 = arith.mulf %16, %15 : vector<8x128xf32>
    %18 = arith.addf %5, %17 : vector<8x128xf32>
    %c3 = arith.constant 3 : index
    %c0_15 = arith.constant 0 : index
    %c0_16 = arith.constant 0 : index
    %19 = vector.load %arg2[%c3, %c0_15, %c0_16] : memref<4x2x128xf32, #tpu.memory_space<vmem>>, vector<1x1x128xf32>
    %20 = vector.shape_cast %19 : vector<1x1x128xf32> to vector<1x128xf32>
    %c3_17 = arith.constant 3 : index
    %c0_18 = arith.constant 0 : index
    %c0_19 = arith.constant 0 : index
    %21 = vector.load %arg3[%c3_17, %c0_18, %c0_19] : memref<4x8x128xf32, #tpu.memory_space<vmem>>, vector<1x8x128xf32>
    %22 = vector.shape_cast %21 : vector<1x8x128xf32> to vector<8x128xf32>
    %23 = vector.broadcast %20 : vector<1x128xf32> to vector<8x128xf32>
    %24 = arith.mulf %23, %22 : vector<8x128xf32>
    %25 = arith.addf %11, %24 : vector<8x128xf32>
    %26 = arith.addf %18, %25 : vector<8x128xf32>
    %c0_20 = arith.constant 0 : index
    %c0_21 = arith.constant 0 : index
    %c0_22 = arith.constant 0 : index
    %27 = vector.load %arg4[%c0_20, %c0_21, %c0_22] : memref<2x8x128xf32, #tpu.memory_space<vmem>>, vector<1x8x128xf32>
    %28 = vector.shape_cast %27 : vector<1x8x128xf32> to vector<8x128xf32>
    %29 = vector.shape_cast %26 : vector<8x128xf32> to vector<1x8x128xf32>
    tpu.vector_store %arg4[%c0_20, %c0_21, %c0_22], %29 {strides = array<i32>} : memref<2x8x128xf32, #tpu.memory_space<vmem>>, vector<1x8x128xf32>,
    %c0_23 = arith.constant 0 : index
    %c1_24 = arith.constant 1 : index
    %c0_25 = arith.constant 0 : index
    %30 = vector.load %arg2[%c0_23, %c1_24, %c0_25] : memref<4x2x128xf32, #tpu.memory_space<vmem>>, vector<1x1x128xf32>
    %31 = vector.shape_cast %30 : vector<1x1x128xf32> to vector<1x128xf32>
    %c0_26 = arith.constant 0 : index
    %c0_27 = arith.constant 0 : index
    %c0_28 = arith.constant 0 : index
    %32 = vector.load %arg3[%c0_26, %c0_27, %c0_28] : memref<4x8x128xf32, #tpu.memory_space<vmem>>, vector<1x8x128xf32>
    %33 = vector.shape_cast %32 : vector<1x8x128xf32> to vector<8x128xf32>
    %34 = vector.broadcast %31 : vector<1x128xf32> to vector<8x128xf32>
    %35 = arith.mulf %34, %33 : vector<8x128xf32>
    %c1_29 = arith.constant 1 : index
    %c1_30 = arith.constant 1 : index
    %c0_31 = arith.constant 0 : index
    %36 = vector.load %arg2[%c1_29, %c1_30, %c0_31] : memref<4x2x128xf32, #tpu.memory_space<vmem>>, vector<1x1x128xf32>
    %37 = vector.shape_cast %36 : vector<1x1x128xf32> to vector<1x128xf32>
    %c1_32 = arith.constant 1 : index
    %c0_33 = arith.constant 0 : index
    %c0_34 = arith.constant 0 : index
    %38 = vector.load %arg3[%c1_32, %c0_33, %c0_34] : memref<4x8x128xf32, #tpu.memory_space<vmem>>, vector<1x8x128xf32>
    %39 = vector.shape_cast %38 : vector<1x8x128xf32> to vector<8x128xf32>
    %40 = vector.broadcast %37 : vector<1x128xf32> to vector<8x128xf32>
    %41 = arith.mulf %40, %39 : vector<8x128xf32>
    %c2_35 = arith.constant 2 : index
    %c1_36 = arith.constant 1 : index
    %c0_37 = arith.constant 0 : index
    %42 = vector.load %arg2[%c2_35, %c1_36, %c0_37] : memref<4x2x128xf32, #tpu.memory_space<vmem>>, vector<1x1x128xf32>
    %43 = vector.shape_cast %42 : vector<1x1x128xf32> to vector<1x128xf32>
    %c2_38 = arith.constant 2 : index
    %c0_39 = arith.constant 0 : index
    %c0_40 = arith.constant 0 : index
    %44 = vector.load %arg3[%c2_38, %c0_39, %c0_40] : memref<4x8x128xf32, #tpu.memory_space<vmem>>, vector<1x8x128xf32>
    %45 = vector.shape_cast %44 : vector<1x8x128xf32> to vector<8x128xf32>
    %46 = vector.broadcast %43 : vector<1x128xf32> to vector<8x128xf32>
    %47 = arith.mulf %46, %45 : vector<8x128xf32>
    %48 = arith.addf %35, %47 : vector<8x128xf32>
    %c3_41 = arith.constant 3 : index
    %c1_42 = arith.constant 1 : index
    %c0_43 = arith.constant 0 : index
    %49 = vector.load %arg2[%c3_41, %c1_42, %c0_43] : memref<4x2x128xf32, #tpu.memory_space<vmem>>, vector<1x1x128xf32>
    %50 = vector.shape_cast %49 : vector<1x1x128xf32> to vector<1x128xf32>
    %c3_44 = arith.constant 3 : index
    %c0_45 = arith.constant 0 : index
    %c0_46 = arith.constant 0 : index
    %51 = vector.load %arg3[%c3_44, %c0_45, %c0_46] : memref<4x8x128xf32, #tpu.memory_space<vmem>>, vector<1x8x128xf32>
    %52 = vector.shape_cast %51 : vector<1x8x128xf32> to vector<8x128xf32>
    %53 = vector.broadcast %50 : vector<1x128xf32> to vector<8x128xf32>
    %54 = arith.mulf %53, %52 : vector<8x128xf32>
    %55 = arith.addf %41, %54 : vector<8x128xf32>
    %56 = arith.addf %48, %55 : vector<8x128xf32>
    %c1_47 = arith.constant 1 : index
    %c0_48 = arith.constant 0 : index
    %c0_49 = arith.constant 0 : index
    %57 = vector.load %arg4[%c1_47, %c0_48, %c0_49] : memref<2x8x128xf32, #tpu.memory_space<vmem>>, vector<1x8x128xf32>
    %58 = vector.shape_cast %57 : vector<1x8x128xf32> to vector<8x128xf32>
    %59 = vector.shape_cast %56 : vector<8x128xf32> to vector<1x8x128xf32>
    tpu.vector_store %arg4[%c1_47, %c0_48, %c0_49], %59 {strides = array<i32>} : memref<2x8x128xf32, #tpu.memory_space<vmem>>, vector<1x8x128xf32>,
    return
  }
  func.func @transform_0(%arg0: i32, %arg1: i32) -> (i32, i32, i32) {
    %c0_i32 = arith.constant 0 : i32
    %c0_i32_0 = arith.constant 0 : i32
    %c0_i32_1 = arith.constant 0 : i32
    return %c0_i32, %c0_i32_0, %arg0 : i32, i32, i32
  }
  func.func @transform_1(%arg0: i32, %arg1: i32) -> (i32, i32, i32) {
    %c0_i32 = arith.constant 0 : i32
    %c0_i32_0 = arith.constant 0 : i32
    return %c0_i32, %arg1, %arg0 : i32, i32, i32
  }
  func.func @transform_2(%arg0: i32, %arg1: i32) -> (i32, i32, i32) {
    %c0_i32 = arith.constant 0 : i32
    %c0_i32_0 = arith.constant 0 : i32
    return %c0_i32, %arg1, %arg0 : i32, i32, i32
  }
}

</mosaic_0001>

<bundles_post_ra>
// kernel: reverse.0
= control target key start
LH: loop header
LB: loop body
LE: loop exit
PB: predicated region body
PF: predicated region fallthrough
CT: control target
= control target key end

     0   :  { %v71_v3 = vlaneseq  ;;  %v64_v9 = vld [vmem:[#allocation0 + $0x7] ss:$-1 sm:$0xff]  ;;  %v78_v12 = vld [vmem:[#allocation0 + $0x17] ss:$-1 sm:$0xff]  ;;  %s329_s0 = inlined_call_operand.vmem [shape: f32[2,4,16,7], index: 0, kind: input, shape index: {}]   ;;  %s330_s1 = inlined_call_operand.vmem [shape: f32[2,4,16,7], index: 1, kind: output, shape index: {}]  }
   0x1   :  { %v44_v0 = vld [vmem:[%s329_s0] sm:$0xff]  ;;  %v46_v1 = vld [vmem:[%s329_s0 + $0x8] sm:$0xff]  ;;  %v48_v2 = vld [vmem:[%s329_s0 + $0x10] sm:$0xff]  ;;  %v65_v10 = vrot.slane %v64_v9, 1  ;;  %v79_v14 = vrot.slane %v78_v12, 1 }
   0x2   :  { %45 = vst [vmem:[#allocation0 + $0x8] sm:$0xff] %v44_v0  ;;  %47 = vst [vmem:[#allocation0 + $0x18] sm:$0xff] %v46_v1  ;;  %v50_v4 = vld [vmem:[%s329_s0 + $0x18] sm:$0xff]  ;;  %v52_v5 = vld [vmem:[%s329_s0 + $0x20] sm:$0xff]  ;;  %v72_v11 = vshrl.u32 %v71_v3, 7 }
   0x3   :  { %49 = vst [vmem:[#allocation0 + $0x28] sm:$0xff] %v48_v2  ;;  %v54_v6 = vld [vmem:[%s329_s0 + $0x28] sm:$0xff]  ;;  %51 = vst [vmem:[#allocation0 + $0x38] sm:$0xff] %v50_v4  ;;  %v56_v7 = vld [vmem:[%s329_s0 + $0x30] sm:$0xff] }
   0x4   :  { %53 = vst [vmem:[#allocation0 + $0x48] sm:$0xff] %v52_v5  ;;  %55 = vst [vmem:[#allocation0 + $0x58] sm:$0xff] %v54_v6  ;;  %v58_v8 = vld [vmem:[%s329_s0 + $0x38] sm:$0xff]  ;;  %v92_v13 = vld [vmem:[#allocation0 + $0x27] ss:$-1 sm:$0xff]  ;;  %vm73_vm0 = vcmp.lt.s32.totalorder %v72_v11, 7 }
   0x5   :  { %57 = vst [vmem:[#allocation0 + $0x68] sm:$0xff] %v56_v7  ;;  %59 = vst [vmem:[#allocation0 + $0x78] sm:$0xff] %v58_v8  ;;  %v93_v15 = vrot.slane %v92_v13, 1  ;;  %v106_v16 = vld [vmem:[#allocation0 + $0x37] ss:$-1 sm:$0xff] }
   0x6   :  { %66 = vst [vmem:[#allocation1] sm:$0xff] %v65_v10  ;;  %v107_v17 = vrot.slane %v106_v16, 1  ;;  %v120_v18 = vld [vmem:[#allocation0 + $0x47] ss:$-1 sm:$0xff]  ;;  %v134_v19 = vld [vmem:[#allocation0 + $0x57] ss:$-1 sm:$0xff] }
   0x7   :  { %80 = vst [vmem:[#allocation1 + $0x8] sm:$0xff] %v79_v14  ;;  %94 = vst [vmem:[#allocation1 + $0x10] sm:$0xff] %v93_v15  ;;  %v121_v20 = vrot.slane %v120_v18, 1  ;;  %v135_v21 = vrot.slane %v134_v19, 1  ;;  %v148_v22 = vld [vmem:[#allocation0 + $0x67] ss:$-1 sm:$0xff] }
   0x8   :  { %v162_v23 = vld [vmem:[#allocation0 + $0x77] ss:$-1 sm:$0xff]  ;;  %108 = vst [vmem:[#allocation1 + $0x18] sm:$0xff] %v107_v17  ;;  %v149_v24 = vrot.slane %v148_v22, 1 }
   0x9   :  { %v163_v25 = vrot.slane %v162_v23, 1  ;;  %v69_v26 = vld [vmem:[#allocation0 + $0xf] ss:$-1 sm:$0xff]  ;;  %v83_v27 = vld [vmem:[#allocation0 + $0x1f] ss:$-1 sm:$0xff]  ;;  %122 = vst [vmem:[#allocation1 + $0x20] sm:$0xff] %v121_v20 }
   0xa   :  { %v97_v28 = vld [vmem:[#allocation0 + $0x2f] ss:$-1 sm:$0xff]  ;;  %136 = vst [vmem:[#allocation1 + $0x28] sm:$0xff] %v135_v21  ;;  %v70_v29 = vrot.slane %v69_v26, 1  ;;  %v84_v30 = vrot.slane %v83_v27, 1  ;;  %150 = vst [vmem:[#allocation1 + $0x30] sm:$0xff] %v149_v24 }
   0xb   :  { %v98_v31 = vrot.slane %v97_v28, 1  ;;  %v111_v32 = vld [vmem:[#allocation0 + $0x3f] ss:$-1 sm:$0xff]  ;;  %164 = vst [vmem:[#allocation1 + $0x38] sm:$0xff] %v163_v25  ;;  %v125_v34 = vld [vmem:[#allocation0 + $0x4f] ss:$-1 sm:$0xff] }
   0xc   :  { %v112_v33 = vrot.slane %v111_v32, 1  ;;  %v139_v35 = vld [vmem:[#allocation0 + $0x5f] ss:$-1 sm:$0xff]  ;;  %74 = vst.msk [vmem:[#allocation1] sm:$0xff] %vm73_vm0, %v70_v29  ;;  %88 = vst.msk [vmem:[#allocation1 + $0x8] sm:$0xff] %vm73_vm0, %v84_v30  ;;  %v126_v36 = vrot.slane %v125_v34, 1 }
   0xd   :  { %102 = vst.msk [vmem:[#allocation1 + $0x10] sm:$0xff] %vm73_vm0, %v98_v31  ;;  %v140_v37 = vrot.slane %v139_v35, 1  ;;  %v153_v38 = vld [vmem:[#allocation0 + $0x6f] ss:$-1 sm:$0xff]  ;;  %v167_v39 = vld [vmem:[#allocation0 + $0x7f] ss:$-1 sm:$0xff] }
   0xe   :  { %116 = vst.msk [vmem:[#allocation1 + $0x18] sm:$0xff] %vm73_vm0, %v112_v33  ;;  %v154_v40 = vrot.slane %v153_v38, 1  ;;  %v168_v41 = vrot.slane %v167_v39, 1  ;;  %130 = vst.msk [vmem:[#allocation1 + $0x20] sm:$0xff] %vm73_vm0, %v126_v36 }
   0xf   :  { %144 = vst.msk [vmem:[#allocation1 + $0x28] sm:$0xff] %vm73_vm0, %v140_v37 }
  0x10   :  { %158 = vst.msk [vmem:[#allocation1 + $0x30] sm:$0xff] %vm73_vm0, %v154_v40  ;;  %172 = vst.msk [vmem:[#allocation1 + $0x38] sm:$0xff] %vm73_vm0, %v168_v41 }
  0x13   :  { %v214_v42 = vld [vmem:[#allocation1] sm:$0xff]  ;;  %v216_v43 = vld [vmem:[#allocation1 + $0x8] sm:$0xff] }
  0x14   :  { %v218_v44 = vld [vmem:[#allocation1 + $0x10] sm:$0xff]  ;;  %215 = vst [vmem:[%s330_s1] sm:$0xff] %v214_v42  ;;  %217 = vst [vmem:[%s330_s1 + $0x8] sm:$0xff] %v216_v43 }
  0x15   :  { %219 = vst [vmem:[%s330_s1 + $0x10] sm:$0xff] %v218_v44  ;;  %v220_v45 = vld [vmem:[#allocation1 + $0x18] sm:$0xff]  ;;  %v222_v46 = vld [vmem:[#allocation1 + $0x20] sm:$0xff] }
  0x16   :  { %221 = vst [vmem:[%s330_s1 + $0x18] sm:$0xff] %v220_v45  ;;  %v224_v47 = vld [vmem:[#allocation1 + $0x28] sm:$0xff]  ;;  %223 = vst [vmem:[%s330_s1 + $0x20] sm:$0xff] %v222_v46 }
  0x17   :  { %225 = vst [vmem:[%s330_s1 + $0x28] sm:$0xff] %v224_v47  ;;  %v226_v48 = vld [vmem:[#allocation1 + $0x30] sm:$0xff]  ;;  %v228_v49 = vld [vmem:[#allocation1 + $0x38] sm:$0xff] }
  0x18   :  { %227 = vst [vmem:[%s330_s1 + $0x30] sm:$0xff] %v226_v48  ;;  %229 = vst [vmem:[%s330_s1 + $0x38] sm:$0xff] %v228_v49 }

// kernel: born_fourier_conv2d.1
= control target key start
LH: loop header
LB: loop body
LE: loop exit
PB: predicated region body
PF: predicated region fallthrough
CT: control target
= control target key end

     0   :  { %7 = vsyncpa [#allocation3], 0  ;;  %s280_s0 = inlined_call_operand.hbm [shape: f32[4,2,128], index: 0, kind: input, shape index: {}]   ;;  %s281_s1 = inlined_call_operand.hbm [shape: f32[4,8,128], index: 1, kind: input, shape index: {}]   ;;  %s282_s2 = inlined_call_operand.hbm [shape: f32[2,8,128], index: 2, kind: output, shape index: {}]  }
   0x1   :  { %8 = vsyncpa [#allocation6], 0 }
   0x2   :  { %9 = vsyncpa [#allocation4], 0  ;;  %s216_s9 = smov [#allocation2]   ;;  %s144_s13 = scalar_lea.hbm %s280_s0, 128 }
   0x3   :  { %s15_s10 = sshll.u32 %s216_s9, 4  ;;  %p145_p0 = scmp.ne.s32.totalorder %s280_s0, %s144_s13  ;;  %s16_s10 = int_to_ptr.vmem [resolvable:$true] %s15_s10 }
   0x4   :  { %p148_p1 = scmp.lt.u32.totalorder %s144_s13, %s280_s0 }
   0x6   :  { %p150_p2 = pnand %p148_p1, %p145_p0 }
   0x8   :  { %153 = shalt.err (!%p150_p2)
}
   0x9   :  { %s154_s18 = scalar_lea.vmem %s16_s10, 128  ;;  %p159_p4 = scmp.lt.s32.totalorder %s16_s10, %s16_s10 }
   0xa   :  { %p155_p3 = scmp.ne.s32.totalorder %s16_s10, %s154_s18  ;;  %p160_p5 = scmp.lt.s32.totalorder %s154_s18, %s154_s18 }
   0xc   :  { %p161_p6 = por %p160_p5, %p159_p4 }
   0xe   :  { %p162_p7 = pnand %p161_p6, %p155_p3 }
  0x10   :  { %165 = shalt.err (!%p162_p7)
}
  0x11   :  { %s217_s19 = smov 32   ;;  %s218_s20 = smov 2  }
  0x12   :  { %21 = dma.hbm_to_vmem [thread:$0]  %s280_s0, 128, %s16_s10, [#allocation3], %s217_s19, %s217_s19, %s218_s20  }
  0x13   :  { %s219_s23 = smov [#allocation5]   ;;  %s166_s27 = scalar_lea.hbm %s281_s1, 512 }
  0x14   :  { %s27_s24 = sshll.u32 %s219_s23, 4  ;;  %p167_p8 = scmp.ne.s32.totalorder %s281_s1, %s166_s27  ;;  %s28_s24 = int_to_ptr.vmem [resolvable:$true] %s27_s24 }
  0x15   :  { %p170_p9 = scmp.lt.u32.totalorder %s166_s27, %s281_s1 }
  0x17   :  { %p172_p10 = pnand %p170_p9, %p167_p8 }
  0x19   :  { %175 = shalt.err (!%p172_p10)
}
  0x1a   :  { %s176_s4 = scalar_lea.vmem %s28_s24, 512  ;;  %p181_p12 = scmp.lt.s32.totalorder %s28_s24, %s28_s24 }
  0x1b   :  { %p177_p11 = scmp.ne.s32.totalorder %s28_s24, %s176_s4  ;;  %p182_p13 = scmp.lt.s32.totalorder %s176_s4, %s176_s4 }
  0x1d   :  { %p183_p0 = por %p182_p13, %p181_p12 }
  0x1f   :  { %p184_p1 = pnand %p183_p0, %p177_p11 }
  0x21   :  { %187 = shalt.err (!%p184_p1)
}
  0x22   :  { %s220_s0 = smov 128   ;;  %s221_s5 = smov 8  }
  0x23   :  { %33 = dma.hbm_to_vmem [thread:$0]  %s281_s1, 512, %s28_s24, [#allocation6], %s220_s0, %s220_s0, %s221_s5  }
  0x24   :  { %210 = dma.done.wait [#allocation3], 128  }
  0x25   :  { %211 = vsyncadd [#allocation3], 4294967168 }
  0x26   :  { %212 = dma.done.wait [#allocation6], 512  }
  0x27   :  { %213 = vsyncadd [#allocation6], 4294966784  ;;  %v129_v0 = vld [vmem:[#allocation2] ss:$0 sm:$0xff]  ;;  %v41_v1 = vld [vmem:[#allocation5] sm:$0xff]  ;;  %s222_s1 = smov [#allocation7]  }
  0x28   :  { %v130_v2 = vld [vmem:[#allocation2 + $0x2] ss:$0 sm:$0xff]  ;;  %v46_v3 = vmul.f32 %v129_v0, %v41_v1  ;;  %v50_v4 = vld [vmem:[#allocation5 + $0x8] sm:$0xff]  ;;  %v131_v5 = vld [vmem:[#allocation2 + $0x4] ss:$0 sm:$0xff]  ;;  %s116_s8 = sshll.u32 %s222_s1, 4  ;;  %s117_s8 = int_to_ptr.vmem [resolvable:$true] %s116_s8 }
  0x29   :  { %v59_v6 = vld [vmem:[#allocation5 + $0x10] sm:$0xff]  ;;  %v55_v7 = vmul.f32 %v130_v2, %v50_v4  ;;  %v132_v9 = vld [vmem:[#allocation2 + $0x6] ss:$0 sm:$0xff]  ;;  %v133_v11 = vld [vmem:[#allocation2 + $0x1] ss:$0 sm:$0xff]  ;;  %s188_s9 = scalar_lea.vmem %s117_s8, 256  ;;  %p193_p3 = scmp.lt.s32.totalorder %s117_s8, %s117_s8 }
  0x2a   :  { %v64_v8 = vmul.f32 %v131_v5, %v59_v6  ;;  %v69_v10 = vld [vmem:[#allocation5 + $0x18] sm:$0xff]  ;;  %v84_v13 = vmul.f32 %v133_v11, %v41_v1  ;;  %p189_p2 = scmp.ne.s32.totalorder %s117_s8, %s188_s9  ;;  %p194_p4 = scmp.lt.s32.totalorder %s188_s9, %s188_s9 }
  0x2b   :  { %v74_v12 = vmul.f32 %v132_v9, %v69_v10  ;;  %v134_v14 = vld [vmem:[#allocation2 + $0x3] ss:$0 sm:$0xff]  ;;  %v135_v15 = vld [vmem:[#allocation2 + $0x5] ss:$0 sm:$0xff]  ;;  %v136_v16 = vld [vmem:[#allocation2 + $0x7] ss:$0 sm:$0xff] }
  0x2c   :  { %v65_v17 = vadd.f32 %v64_v8, %v46_v3  ;;  %v91_v18 = vmul.f32 %v134_v14, %v50_v4  ;;  %v98_v19 = vmul.f32 %v135_v15, %v59_v6  ;;  %v106_v20 = vmul.f32 %v136_v16, %v69_v10  ;;  %p195_p5 = por %p194_p4, %p193_p3 }
  0x2d   :  { %v75_v21 = vadd.f32 %v74_v12, %v55_v7 }
  0x2e   :  { %v99_v22 = vadd.f32 %v98_v19, %v84_v13  ;;  %v107_v23 = vadd.f32 %v106_v20, %v91_v18  ;;  %p196_p6 = pnand %p195_p5, %p189_p2 }
  0x2f   :  { %v76_v24 = vadd.f32 %v75_v21, %v65_v17 }
  0x30   :  { %v108_v25 = vadd.f32 %v107_v23, %v99_v22 }
  0x31   :  { %77 = vst [vmem:[#allocation7] sm:$0xff] %v76_v24 }
  0x32   :  { %110 = vst [vmem:[#allocation7 + $0x8] sm:$0xff] %v108_v25 }
  0x33   :  { %199 = shalt.err (!%p196_p6)
}
  0x34   :  { %s200_s12 = scalar_lea.hbm %s282_s2, 256 }
  0x35   :  { %p201_p7 = scmp.ne.s32.totalorder %s282_s2, %s200_s12  ;;  %p204_p8 = scmp.lt.u32.totalorder %s200_s12, %s282_s2 }
  0x37   :  { %p206_p9 = pnand %p204_p8, %p201_p7 }
  0x39   :  { %209 = shalt.err (!%p206_p9)
}
  0x3a   :  { %122 = dma.vmem_to_hbm [thread:$0]  %s117_s8, 256, %s282_s2, [#allocation4], %s220_s0, %s220_s0, %s221_s5  }
  0x3b   :  { %214 = dma.done.wait [#allocation4], 256  }
  0x3c   :  { %215 = vsyncadd [#allocation4], 4294967040 }
  0x3d   :  { %126 = vsyncpa [#allocation3], 1 }
  0x3e   :  { %127 = vsyncpa [#allocation6], 1 }
  0x3f   :  { %128 = vsyncpa [#allocation4], 1 }

</bundles_post_ra>
